<compile_context>
chip_gen: v7x
topology: tpu7x:2x2x1
jax: 0.10.0
libtpu: 0.0.40
codegen_flags: <defaults>
</compile_context>

<pallas_src>
import math

import jax
import jax.numpy as jnp
from jax.experimental import pallas as pl
from jax.experimental.pallas import tpu as pltpu

_MIB = 1024 * 1024


def _round_up(x, m):
    return (x + m - 1) // m * m


def _vmem_limit_bytes():
    """Generation-aware scoped-VMEM limit (v5e/v6e: 128 MiB phys, v7x: 64 MiB)."""
    try:
        cap = int(pltpu.get_tpu_info().vmem_capacity_bytes)
    except Exception:  # API drift / non-TPU trace -> conservative default
        cap = 64 * _MIB
    # ~25% headroom for Mosaic-internal scratch; never below the old safe 32 MiB.
    return max(32 * _MIB, min(int(cap * 0.75), 96 * _MIB))


def _make_mlp_kernel(mlp_depth, mxu_dtype, approx_gelu):
    """Fused MLP-head kernel.

    Ref order:
      (p_cls, s_cls,
       W0_p, W0_s, b0,                         # layer 0, concat fused via split W0
       W1, b1, ..., W_{depth-1}, b_{depth-1},  # remaining hidden layers
       W_lastT, b_last,                        # final Linear(., 1), W transposed to [1, U]
       out)
    Hidden layers: y = GELU(x @ W + b).  Final: y = sigmoid(sum(x * W_lastT) + b).
    Dropout is identity at inference time.
    """
    inv_sqrt2 = 1.0 / math.sqrt(2.0)
    c_tanh = math.sqrt(2.0 / math.pi)

    if approx_gelu:
        # tanh approximation -> EUP slot instead of the VALU erf polynomial chain
        # (the VALU is the saturating unit for this small-K/N head).
        def gelu(h):
            return 0.5 * h * (1.0 + jnp.tanh(c_tanh * (h + 0.044715 * h * h * h)))
    else:
        # exact erf GELU: parity with torch.nn.GELU() default.
        def gelu(h):
            return 0.5 * h * (1.0 + jax.lax.erf(h * inv_sqrt2))

    def kernel(p_ref, s_ref, *refs):
        out_ref = refs[-1]
        w0p_ref, w0s_ref, b0_ref = refs[0], refs[1], refs[2]

        # Layer 0: fused concat  ->  [p | s] @ W0 + b0  ==  p @ W0_p + s @ W0_s + b0.
        # Activations already arrive in mxu_dtype (cast hoisted to prepare()).
        # TODO(synk): for 2*d_model <= 256 a single K=2*d_model dot against the
        # un-split W0 (in-VMEM concat) would save one MXU weight push; skipped to
        # keep the lane layout simple.
        h = (jnp.dot(p_ref[...], w0p_ref[...], preferred_element_type=jnp.float32)
             + jnp.dot(s_ref[...], w0s_ref[...], preferred_element_type=jnp.float32)
             + b0_ref[...])
        h = gelu(h)

        # Hidden layers 1 .. mlp_depth-1 (f32 accumulate, element-wise math in f32).
        for i in range(mlp_depth - 1):
            w_ref = refs[3 + 2 * i]
            b_ref = refs[4 + 2 * i]
            h = jnp.dot(h.astype(mxu_dtype), w_ref[...],
                        preferred_element_type=jnp.float32) + b_ref[...]
            h = gelu(h)

        # Final Linear(U_last, 1) + sigmoid: N=1 -> VPU multiply + lane reduction
        # instead of a nearly empty MXU pass.
        w_last = refs[3 + 2 * (mlp_depth - 1)][...]   # [1, U_last], f32
        b_last = refs[4 + 2 * (mlp_depth - 1)][...]   # [1, 1],      f32
        logits = jnp.sum(h * w_last, axis=-1, keepdims=True) + b_last
        out_ref[...] = jax.nn.sigmoid(logits).astype(out_ref.dtype)

    return kernel


def prepare_output_mlp_params(weights, biases, *, d_model, mxu_dtype=jnp.bfloat16):
    """Pre-pack weights ONCE (split W0, cast to mxu_dtype, transpose W_last) so the
    hot forward path does not re-emit per-call XLA copy/convert HBM traffic."""
    mlp_depth = len(weights) - 1
    assert mlp_depth >= 1, "expects at least one hidden layer"

    ws, bs = [], []
    for w, b in zip(weights, biases):
        w = jnp.asarray(w)
        assert w.ndim == 2, f"weight must be rank-2, got shape {w.shape}"
        b = jnp.asarray(b).reshape(1, -1)       # defensive: accept [N] or [1, N]
        assert b.shape[1] == w.shape[1], (b.shape, w.shape)
        ws.append(w)
        bs.append(b)
    assert ws[0].shape[0] == 2 * d_model, "W0 fan-in must equal 2*d_model"
    assert ws[-1].shape[1] == 1, "final layer must project to 1 unit"

    params = [
        ws[0][:d_model, :].astype(mxu_dtype),        # W0 prot half
        ws[0][d_model:, :].astype(mxu_dtype),        # W0 smiles half
        bs[0].astype(jnp.float32),
    ]
    for i in range(1, mlp_depth):
        params.append(ws[i].astype(mxu_dtype))
        params.append(bs[i].astype(jnp.float32))
    params.append(jnp.transpose(ws[-1]).astype(jnp.float32))   # [1, U_last]
    params.append(bs[-1].astype(jnp.float32))                  # [1, 1]

    units = [2 * d_model] + [int(w.shape[1]) for w in ws]
    return {
        "params": tuple(jax.device_put(p) for p in params),
        "mlp_depth": mlp_depth,
        "d_model": d_model,
        "mxu_dtype": mxu_dtype,
        "units": units,
    }


def output_mlp_forward(prot, smiles, packed, *, block_rows=512, approx_gelu=False):
    """Forward pass of OutputMLP.

    prot, smiles : [B, S, d_model]
    packed       : result of prepare_output_mlp_params()
    returns      : [B, 1] float32 probabilities
    """
    mlp_depth = packed["mlp_depth"]
    d_model = packed["d_model"]
    mxu_dtype = packed["mxu_dtype"]
    units = packed["units"]
    params = packed["params"]

    batch = prot.shape[0]
    assert prot.shape[-1] == d_model and smiles.shape[-1] == d_model

    # CLS-token slice (inputs[k][:, 0, :]) -- cheap XLA glue; the concat itself is
    # fused into the kernel via the split W0.  Activations are streamed in
    # mxu_dtype: half the per-step DMA bytes and half the activation
    # double-buffer VMEM vs f32, and no per-step in-kernel cast.
    prot_cls = prot[:, 0, :].astype(mxu_dtype)
    smiles_cls = smiles[:, 0, :].astype(mxu_dtype)

    # ---- batch tiling -------------------------------------------------------
    sublane = 16 if jnp.dtype(mxu_dtype).itemsize == 2 else 8   # bf16 packs 2 rows/sublane
    padded = _round_up(batch, sublane)
    # >=2 grid steps whenever possible: enables DMA/compute overlap and lets
    # dimension_semantics=("parallel",) shard across v7x's two TensorCores.
    n_steps = max(2, pl.cdiv(padded, block_rows))
    tm = _round_up(pl.cdiv(padded, n_steps), sublane)
    if tm >= 256:
        tm = _round_up(tm, 256)          # full-height MXU passes on v6e/v7x
    elif tm >= 128:
        tm = _round_up(tm, 128)          # v5e MXU height
    tm = min(tm, padded)
    padded = _round_up(padded, tm)       # full blocks only
    grid = (padded // tm,)

    if padded != batch:
        pad = ((0, padded - batch), (0, 0))
        prot_cls = jnp.pad(prot_cls, pad)
        smiles_cls = jnp.pad(smiles_cls, pad)

    act_spec = pl.BlockSpec((tm, d_model), lambda i: (i, 0))
    # TODO(synk): out last-dim is 1 (masked vst); a lane-dense (1, tm) slab only
    # pays off if this tiny head ever dominates at very large batch.
    out_specs = pl.BlockSpec((tm, 1), lambda i: (i, 0))

    flops = 2 * batch * sum(units[i] * units[i + 1] for i in range(len(units) - 1))
    transcendentals = batch * (sum(units[1:-1]) + 1)   # GELU per hidden elem + sigmoid
    bytes_accessed = int(
        prot_cls.size * prot_cls.dtype.itemsize
        + smiles_cls.size * smiles_cls.dtype.itemsize
        + padded * 4
        + sum(p.size * p.dtype.itemsize for p in params))

    def run(single_buffer_params):
        # Parameters: constant block index -> VMEM-resident across grid steps.
        # Buffered(1) drops the pointless second buffer the default
        # double-buffering would otherwise allocate (halves parameter VMEM).
        if single_buffer_params:
            param_specs = [
                pl.BlockSpec(p.shape, lambda i: (0, 0), pipeline_mode=pl.Buffered(1))
                for p in params
            ]
        else:
            param_specs = [pl.BlockSpec(p.shape, lambda i: (0, 0)) for p in params]
        return pl.pallas_call(
            _make_mlp_kernel(mlp_depth, mxu_dtype, approx_gelu),
            out_shape=jax.ShapeDtypeStruct((padded, 1), jnp.float32),
            grid=grid,
            in_specs=[act_spec, act_spec] + param_specs,
            out_specs=out_specs,
            compiler_params=pltpu.CompilerParams(
                dimension_semantics=("parallel",),      # megacore sharding on v7x
                vmem_limit_bytes=_vmem_limit_bytes(),   # generation-aware limit
            ),
            cost_estimate=pl.CostEstimate(
                flops=flops,
                transcendentals=transcendentals,
                bytes_accessed=bytes_accessed,
            ),
        )(prot_cls, smiles_cls, *params)

    try:
        out = run(single_buffer_params=True)
    except Exception:
        # Fallback for JAX versions that reject single-buffered pipeline_mode on
        # pallas_call inputs; costs only the extra (small) parameter buffer.
        out = run(single_buffer_params=False)
    return out[:batch]


def init_output_mlp_params(key, d_model, mlp_depth, mlp_units):
    """Deterministic Linear-style init (uniform +-1/sqrt(fan_in)), mirrors the module."""
    units = list(mlp_units)
    units.insert(0, 2 * d_model)  # mirrors mlp_units.insert(0, 2*d_model)
    units.append(1)               # final Linear(mlp_units[-1], 1)

    weights, biases = [], []
    for i in range(mlp_depth + 1):
        fan_in, fan_out = units[i], units[i + 1]
        key, kw, kb = jax.random.split(key, 3)
        bound = 1.0 / math.sqrt(fan_in)
        w = jax.random.uniform(kw, (fan_in, fan_out), jnp.float32, -bound, bound)
        b = jax.random.uniform(kb, (1, fan_out), jnp.float32, -bound, bound)
        weights.append(w)
        biases.append(b)
    return weights, biases


if __name__ == "__main__":
    # Small, module-consistent shapes; batch chosen so padding + multi-step grid
    # paths are exercised (20 -> pad, 2 grid steps).
    batch, seq, d_model = 20, 8, 32
    mlp_depth = 2
    mlp_units = [32, 16]          # hidden widths (before the 2*d_model insert)
    dropout_rate = 0.1            # TODO(synk): dropout is identity at inference; not applied.

    key = jax.random.PRNGKey(0)
    key, kp, ks = jax.random.split(key, 3)
    prot = jax.random.normal(kp, (batch, seq, d_model), jnp.float32)
    smiles = jax.random.normal(ks, (batch, seq, d_model), jnp.float32)

    weights, biases = init_output_mlp_params(key, d_model, mlp_depth, mlp_units)

    # Pre-packed params (hoisted weight split/cast/transpose): perf + exact variants.
    packed_bf16 = prepare_output_mlp_params(weights, biases, d_model=d_model,
                                            mxu_dtype=jnp.bfloat16)
    packed_f32 = prepare_output_mlp_params(weights, biases, d_model=d_model,
                                           mxu_dtype=jnp.float32)

    # Perf path: bf16 streamed activations + bf16 MXU operands, f32 accumulation.
    out_bf16 = jax.block_until_ready(output_mlp_forward(prot, smiles, packed_bf16))
    # Perf path + tanh-approx GELU (EUP slot instead of VALU erf chain).
    out_bf16_approx = jax.block_until_ready(
        output_mlp_forward(prot, smiles, packed_bf16, approx_gelu=True))
    # Exact path: full f32 matmuls + exact erf GELU (tight torch parity).
    out_f32 = jax.block_until_ready(output_mlp_forward(prot, smiles, packed_f32))

    # Pure-JAX reference (exact PyTorch semantics, f32 throughout).
    def ref_forward(prot, smiles, weights, biases):
        h = jnp.concatenate([prot[:, 0, :], smiles[:, 0, :]], axis=1)
        for i, (w, b) in enumerate(zip(weights, biases)):
            h = h @ w + b
            if i < len(weights) - 1:
                h = 0.5 * h * (1.0 + jax.lax.erf(h / jnp.sqrt(2.0)))
        return jax.nn.sigmoid(h)

    ref = ref_forward(prot, smiles, weights, biases)
    assert out_f32.shape == (batch, 1), out_f32.shape
    assert out_bf16.shape == (batch, 1), out_bf16.shape
    assert jnp.allclose(out_f32, ref, atol=1e-5, rtol=1e-5), (out_f32, ref)
    # bf16 operands / f32 accumulation: small, bounded numerics delta.
    assert jnp.allclose(out_bf16, ref, atol=2e-2, rtol=2e-2), (out_bf16, ref)
    # tanh-approx GELU on top of bf16: still a small delta after sigmoid.
    assert jnp.allclose(out_bf16_approx, ref, atol=3e-2, rtol=3e-2), (out_bf16_approx, ref)

    print("KERNEL_OK")
</pallas_src>

<mosaic_0001>
module attributes {stable_mosaic.version = 11 : i64} {
  func.func @kernel(%arg0: i32, %arg1: memref<16x32xbf16, #tpu.memory_space<vmem>>, %arg2: memref<16x32xbf16, #tpu.memory_space<vmem>>, %arg3: memref<32x32xbf16, #tpu.memory_space<vmem>>, %arg4: memref<32x32xbf16, #tpu.memory_space<vmem>>, %arg5: memref<1x32xf32, #tpu.memory_space<vmem>>, %arg6: memref<32x16xbf16, #tpu.memory_space<vmem>>, %arg7: memref<1x16xf32, #tpu.memory_space<vmem>>, %arg8: memref<1x16xf32, #tpu.memory_space<vmem>>, %arg9: memref<1x1xf32, #tpu.memory_space<vmem>>, %arg10: memref<16x1xf32, #tpu.memory_space<vmem>>) attributes {dimension_semantics = [#tpu.dimension_semantics<parallel>], iteration_bounds = array<i64: 2>, scalar_prefetch = 0 : i64, scratch_operands = 0 : i64, tpu.core_type = #tpu.core_type<tc>, window_params = [{transform_indices = @transform_0, window_bounds = array<i64: 16, 32>}, {transform_indices = @transform_1, window_bounds = array<i64: 16, 32>}, {pipeline_mode = #tpu.pipeline_mode<synchronous>, transform_indices = @transform_2, window_bounds = array<i64: 32, 32>}, {pipeline_mode = #tpu.pipeline_mode<synchronous>, transform_indices = @transform_3, window_bounds = array<i64: 32, 32>}, {pipeline_mode = #tpu.pipeline_mode<synchronous>, transform_indices = @transform_4, window_bounds = array<i64: 1, 32>}, {pipeline_mode = #tpu.pipeline_mode<synchronous>, transform_indices = @transform_5, window_bounds = array<i64: 32, 16>}, {pipeline_mode = #tpu.pipeline_mode<synchronous>, transform_indices = @transform_6, window_bounds = array<i64: 1, 16>}, {pipeline_mode = #tpu.pipeline_mode<synchronous>, transform_indices = @transform_7, window_bounds = array<i64: 1, 16>}, {pipeline_mode = #tpu.pipeline_mode<synchronous>, transform_indices = @transform_8, window_bounds = array<i64: 1, 1>}, {transform_indices = @transform_9, window_bounds = array<i64: 16, 1>}]} {
    %c0 = arith.constant 0 : index
    %c0_0 = arith.constant 0 : index
    %0 = vector.load %arg1[%c0, %c0_0] : memref<16x32xbf16, #tpu.memory_space<vmem>>, vector<16x32xbf16>
    %c0_1 = arith.constant 0 : index
    %c0_2 = arith.constant 0 : index
    %1 = vector.load %arg3[%c0_1, %c0_2] : memref<32x32xbf16, #tpu.memory_space<vmem>>, vector<32x32xbf16>
    %cst = arith.constant dense<0.000000e+00> : vector<16x32xf32>
    %2 = tpu.matmul %0, %1, %cst {dimension_numbers = #tpu.dot_dimension_numbers<[1], [0], [0], [1], [0, 0, 1, 1], [], []>} : vector<16x32xbf16>, vector<32x32xbf16>, vector<16x32xf32> -> vector<16x32xf32>
    %c0_3 = arith.constant 0 : index
    %c0_4 = arith.constant 0 : index
    %3 = vector.load %arg2[%c0_3, %c0_4] : memref<16x32xbf16, #tpu.memory_space<vmem>>, vector<16x32xbf16>
    %c0_5 = arith.constant 0 : index
    %c0_6 = arith.constant 0 : index
    %4 = vector.load %arg4[%c0_5, %c0_6] : memref<32x32xbf16, #tpu.memory_space<vmem>>, vector<32x32xbf16>
    %cst_7 = arith.constant dense<0.000000e+00> : vector<16x32xf32>
    %5 = tpu.matmul %3, %4, %cst_7 {dimension_numbers = #tpu.dot_dimension_numbers<[1], [0], [0], [1], [0, 0, 1, 1], [], []>} : vector<16x32xbf16>, vector<32x32xbf16>, vector<16x32xf32> -> vector<16x32xf32>
    %6 = arith.addf %2, %5 : vector<16x32xf32>
    %c0_8 = arith.constant 0 : index
    %c0_9 = arith.constant 0 : index
    %7 = vector.load %arg5[%c0_8, %c0_9] : memref<1x32xf32, #tpu.memory_space<vmem>>, vector<1x32xf32>
    %8 = vector.broadcast %7 : vector<1x32xf32> to vector<16x32xf32>
    %9 = arith.addf %6, %8 : vector<16x32xf32>
    %cst_10 = arith.constant 5.000000e-01 : f32
    %10 = vector.broadcast %cst_10 : f32 to vector<16x32xf32>
    %11 = arith.mulf %10, %9 : vector<16x32xf32>
    %cst_11 = arith.constant 0.707106769 : f32
    %12 = vector.broadcast %cst_11 : f32 to vector<16x32xf32>
    %13 = arith.mulf %9, %12 : vector<16x32xf32>
    %14 = math.erf %13 : vector<16x32xf32>
    %cst_12 = arith.constant 1.000000e+00 : f32
    %15 = vector.broadcast %cst_12 : f32 to vector<16x32xf32>
    %16 = arith.addf %15, %14 : vector<16x32xf32>
    %17 = arith.mulf %11, %16 : vector<16x32xf32>
    %18 = arith.truncf %17 : vector<16x32xf32> to vector<16x32xbf16>
    %c0_13 = arith.constant 0 : index
    %c0_14 = arith.constant 0 : index
    %19 = vector.load %arg6[%c0_13, %c0_14] : memref<32x16xbf16, #tpu.memory_space<vmem>>, vector<32x16xbf16>
    %cst_15 = arith.constant dense<0.000000e+00> : vector<16x16xf32>
    %20 = tpu.matmul %18, %19, %cst_15 {dimension_numbers = #tpu.dot_dimension_numbers<[1], [0], [0], [1], [0, 0, 1, 1], [], []>} : vector<16x32xbf16>, vector<32x16xbf16>, vector<16x16xf32> -> vector<16x16xf32>
    %c0_16 = arith.constant 0 : index
    %c0_17 = arith.constant 0 : index
    %21 = vector.load %arg7[%c0_16, %c0_17] : memref<1x16xf32, #tpu.memory_space<vmem>>, vector<1x16xf32>
    %22 = vector.broadcast %21 : vector<1x16xf32> to vector<16x16xf32>
    %23 = arith.addf %20, %22 : vector<16x16xf32>
    %cst_18 = arith.constant 5.000000e-01 : f32
    %24 = vector.broadcast %cst_18 : f32 to vector<16x16xf32>
    %25 = arith.mulf %24, %23 : vector<16x16xf32>
    %cst_19 = arith.constant 0.707106769 : f32
    %26 = vector.broadcast %cst_19 : f32 to vector<16x16xf32>
    %27 = arith.mulf %23, %26 : vector<16x16xf32>
    %28 = math.erf %27 : vector<16x16xf32>
    %cst_20 = arith.constant 1.000000e+00 : f32
    %29 = vector.broadcast %cst_20 : f32 to vector<16x16xf32>
    %30 = arith.addf %29, %28 : vector<16x16xf32>
    %31 = arith.mulf %25, %30 : vector<16x16xf32>
    %c0_21 = arith.constant 0 : index
    %c0_22 = arith.constant 0 : index
    %32 = vector.load %arg8[%c0_21, %c0_22] : memref<1x16xf32, #tpu.memory_space<vmem>>, vector<1x16xf32>
    %c0_23 = arith.constant 0 : index
    %c0_24 = arith.constant 0 : index
    %33 = vector.load %arg9[%c0_23, %c0_24] : memref<1x1xf32, #tpu.memory_space<vmem>>, vector<1x1xf32>
    %34 = vector.broadcast %32 : vector<1x16xf32> to vector<16x16xf32>
    %35 = arith.mulf %31, %34 : vector<16x16xf32>
    %cst_25 = arith.constant dense<0.000000e+00> : vector<16xf32>
    %36 = vector.multi_reduction <add>, %35, %cst_25 [1] : vector<16x16xf32> to vector<16xf32>
    %37 = vector.shape_cast %36 : vector<16xf32> to vector<16x1xf32>
    %38 = vector.broadcast %33 : vector<1x1xf32> to vector<16x1xf32>
    %39 = arith.addf %37, %38 : vector<16x1xf32>
    %40 = arith.negf %39 : vector<16x1xf32>
    %41 = math.exp %40 : vector<16x1xf32>
    %cst_26 = arith.constant 1.000000e+00 : f32
    %42 = vector.broadcast %cst_26 : f32 to vector<16x1xf32>
    %43 = arith.addf %42, %41 : vector<16x1xf32>
    %44 = arith.divf %42, %43 : vector<16x1xf32>
    %c0_27 = arith.constant 0 : index
    %c0_28 = arith.constant 0 : index
    %45 = vector.load %arg10[%c0_27, %c0_28] : memref<16x1xf32, #tpu.memory_space<vmem>>, vector<16x1xf32>
    tpu.vector_store %arg10[%c0_27, %c0_28], %44 {strides = array<i32>} : memref<16x1xf32, #tpu.memory_space<vmem>>, vector<16x1xf32>,
    return
  }
  func.func @transform_0(%arg0: i32) -> (i32, i32) {
    %c0_i32 = arith.constant 0 : i32
    %c0_i32_0 = arith.constant 0 : i32
    return %arg0, %c0_i32 : i32, i32
  }
  func.func @transform_1(%arg0: i32) -> (i32, i32) {
    %c0_i32 = arith.constant 0 : i32
    %c0_i32_0 = arith.constant 0 : i32
    return %arg0, %c0_i32 : i32, i32
  }
  func.func @transform_2(%arg0: i32) -> (i32, i32) {
    %c0_i32 = arith.constant 0 : i32
    %c0_i32_0 = arith.constant 0 : i32
    %c0_i32_1 = arith.constant 0 : i32
    return %c0_i32, %c0_i32_0 : i32, i32
  }
  func.func @transform_3(%arg0: i32) -> (i32, i32) {
    %c0_i32 = arith.constant 0 : i32
    %c0_i32_0 = arith.constant 0 : i32
    %c0_i32_1 = arith.constant 0 : i32
    return %c0_i32, %c0_i32_0 : i32, i32
  }
  func.func @transform_4(%arg0: i32) -> (i32, i32) {
    %c0_i32 = arith.constant 0 : i32
    %c0_i32_0 = arith.constant 0 : i32
    %c0_i32_1 = arith.constant 0 : i32
    return %c0_i32, %c0_i32_0 : i32, i32
  }
  func.func @transform_5(%arg0: i32) -> (i32, i32) {
    %c0_i32 = arith.constant 0 : i32
    %c0_i32_0 = arith.constant 0 : i32
    %c0_i32_1 = arith.constant 0 : i32
    return %c0_i32, %c0_i32_0 : i32, i32
  }
  func.func @transform_6(%arg0: i32) -> (i32, i32) {
    %c0_i32 = arith.constant 0 : i32
    %c0_i32_0 = arith.constant 0 : i32
    %c0_i32_1 = arith.constant 0 : i32
    return %c0_i32, %c0_i32_0 : i32, i32
  }
  func.func @transform_7(%arg0: i32) -> (i32, i32) {
    %c0_i32 = arith.constant 0 : i32
    %c0_i32_0 = arith.constant 0 : i32
    %c0_i32_1 = arith.constant 0 : i32
    return %c0_i32, %c0_i32_0 : i32, i32
  }
  func.func @transform_8(%arg0: i32) -> (i32, i32) {
    %c0_i32 = arith.constant 0 : i32
    %c0_i32_0 = arith.constant 0 : i32
    %c0_i32_1 = arith.constant 0 : i32
    return %c0_i32, %c0_i32_0 : i32, i32
  }
  func.func @transform_9(%arg0: i32) -> (i32, i32) {
    %c0_i32 = arith.constant 0 : i32
    %c0_i32_0 = arith.constant 0 : i32
    return %arg0, %c0_i32 : i32, i32
  }
}

module attributes {stable_mosaic.version = 11 : i64} {
  func.func @kernel(%arg0: i32, %arg1: memref<16x32xbf16, #tpu.memory_space<vmem>>, %arg2: memref<16x32xbf16, #tpu.memory_space<vmem>>, %arg3: memref<32x32xbf16, #tpu.memory_space<vmem>>, %arg4: memref<32x32xbf16, #tpu.memory_space<vmem>>, %arg5: memref<1x32xf32, #tpu.memory_space<vmem>>, %arg6: memref<32x16xbf16, #tpu.memory_space<vmem>>, %arg7: memref<1x16xf32, #tpu.memory_space<vmem>>, %arg8: memref<1x16xf32, #tpu.memory_space<vmem>>, %arg9: memref<1x1xf32, #tpu.memory_space<vmem>>, %arg10: memref<16x1xf32, #tpu.memory_space<vmem>>) attributes {dimension_semantics = [#tpu.dimension_semantics<parallel>], iteration_bounds = array<i64: 2>, scalar_prefetch = 0 : i64, scratch_operands = 0 : i64, tpu.core_type = #tpu.core_type<tc>, window_params = [{transform_indices = @transform_0, window_bounds = array<i64: 16, 32>}, {transform_indices = @transform_1, window_bounds = array<i64: 16, 32>}, {pipeline_mode = #tpu.pipeline_mode<synchronous>, transform_indices = @transform_2, window_bounds = array<i64: 32, 32>}, {pipeline_mode = #tpu.pipeline_mode<synchronous>, transform_indices = @transform_3, window_bounds = array<i64: 32, 32>}, {pipeline_mode = #tpu.pipeline_mode<synchronous>, transform_indices = @transform_4, window_bounds = array<i64: 1, 32>}, {pipeline_mode = #tpu.pipeline_mode<synchronous>, transform_indices = @transform_5, window_bounds = array<i64: 32, 16>}, {pipeline_mode = #tpu.pipeline_mode<synchronous>, transform_indices = @transform_6, window_bounds = array<i64: 1, 16>}, {pipeline_mode = #tpu.pipeline_mode<synchronous>, transform_indices = @transform_7, window_bounds = array<i64: 1, 16>}, {pipeline_mode = #tpu.pipeline_mode<synchronous>, transform_indices = @transform_8, window_bounds = array<i64: 1, 1>}, {transform_indices = @transform_9, window_bounds = array<i64: 16, 1>}]} {
    %c0 = arith.constant 0 : index
    %c0_0 = arith.constant 0 : index
    %0 = vector.load %arg1[%c0, %c0_0] : memref<16x32xbf16, #tpu.memory_space<vmem>>, vector<16x32xbf16>
    %c0_1 = arith.constant 0 : index
    %c0_2 = arith.constant 0 : index
    %1 = vector.load %arg3[%c0_1, %c0_2] : memref<32x32xbf16, #tpu.memory_space<vmem>>, vector<32x32xbf16>
    %cst = arith.constant dense<0.000000e+00> : vector<16x32xf32>
    %2 = tpu.matmul %0, %1, %cst {dimension_numbers = #tpu.dot_dimension_numbers<[1], [0], [0], [1], [0, 0, 1, 1], [], []>} : vector<16x32xbf16>, vector<32x32xbf16>, vector<16x32xf32> -> vector<16x32xf32>
    %c0_3 = arith.constant 0 : index
    %c0_4 = arith.constant 0 : index
    %3 = vector.load %arg2[%c0_3, %c0_4] : memref<16x32xbf16, #tpu.memory_space<vmem>>, vector<16x32xbf16>
    %c0_5 = arith.constant 0 : index
    %c0_6 = arith.constant 0 : index
    %4 = vector.load %arg4[%c0_5, %c0_6] : memref<32x32xbf16, #tpu.memory_space<vmem>>, vector<32x32xbf16>
    %cst_7 = arith.constant dense<0.000000e+00> : vector<16x32xf32>
    %5 = tpu.matmul %3, %4, %cst_7 {dimension_numbers = #tpu.dot_dimension_numbers<[1], [0], [0], [1], [0, 0, 1, 1], [], []>} : vector<16x32xbf16>, vector<32x32xbf16>, vector<16x32xf32> -> vector<16x32xf32>
    %6 = arith.addf %2, %5 : vector<16x32xf32>
    %c0_8 = arith.constant 0 : index
    %c0_9 = arith.constant 0 : index
    %7 = vector.load %arg5[%c0_8, %c0_9] : memref<1x32xf32, #tpu.memory_space<vmem>>, vector<1x32xf32>
    %8 = vector.broadcast %7 : vector<1x32xf32> to vector<16x32xf32>
    %9 = arith.addf %6, %8 : vector<16x32xf32>
    %cst_10 = arith.constant 5.000000e-01 : f32
    %10 = vector.broadcast %cst_10 : f32 to vector<16x32xf32>
    %11 = arith.mulf %10, %9 : vector<16x32xf32>
    %cst_11 = arith.constant 0.707106769 : f32
    %12 = vector.broadcast %cst_11 : f32 to vector<16x32xf32>
    %13 = arith.mulf %9, %12 : vector<16x32xf32>
    %14 = math.erf %13 : vector<16x32xf32>
    %cst_12 = arith.constant 1.000000e+00 : f32
    %15 = vector.broadcast %cst_12 : f32 to vector<16x32xf32>
    %16 = arith.addf %15, %14 : vector<16x32xf32>
    %17 = arith.mulf %11, %16 : vector<16x32xf32>
    %18 = arith.truncf %17 : vector<16x32xf32> to vector<16x32xbf16>
    %c0_13 = arith.constant 0 : index
    %c0_14 = arith.constant 0 : index
    %19 = vector.load %arg6[%c0_13, %c0_14] : memref<32x16xbf16, #tpu.memory_space<vmem>>, vector<32x16xbf16>
    %cst_15 = arith.constant dense<0.000000e+00> : vector<16x16xf32>
    %20 = tpu.matmul %18, %19, %cst_15 {dimension_numbers = #tpu.dot_dimension_numbers<[1], [0], [0], [1], [0, 0, 1, 1], [], []>} : vector<16x32xbf16>, vector<32x16xbf16>, vector<16x16xf32> -> vector<16x16xf32>
    %c0_16 = arith.constant 0 : index
    %c0_17 = arith.constant 0 : index
    %21 = vector.load %arg7[%c0_16, %c0_17] : memref<1x16xf32, #tpu.memory_space<vmem>>, vector<1x16xf32>
    %22 = vector.broadcast %21 : vector<1x16xf32> to vector<16x16xf32>
    %23 = arith.addf %20, %22 : vector<16x16xf32>
    %cst_18 = arith.constant 5.000000e-01 : f32
    %24 = vector.broadcast %cst_18 : f32 to vector<16x16xf32>
    %25 = arith.mulf %24, %23 : vector<16x16xf32>
    %cst_19 = arith.constant 0.707106769 : f32
    %26 = vector.broadcast %cst_19 : f32 to vector<16x16xf32>
    %27 = arith.mulf %23, %26 : vector<16x16xf32>
    %28 = math.erf %27 : vector<16x16xf32>
    %cst_20 = arith.constant 1.000000e+00 : f32
    %29 = vector.broadcast %cst_20 : f32 to vector<16x16xf32>
    %30 = arith.addf %29, %28 : vector<16x16xf32>
    %31 = arith.mulf %25, %30 : vector<16x16xf32>
    %c0_21 = arith.constant 0 : index
    %c0_22 = arith.constant 0 : index
    %32 = vector.load %arg8[%c0_21, %c0_22] : memref<1x16xf32, #tpu.memory_space<vmem>>, vector<1x16xf32>
    %c0_23 = arith.constant 0 : index
    %c0_24 = arith.constant 0 : index
    %33 = vector.load %arg9[%c0_23, %c0_24] : memref<1x1xf32, #tpu.memory_space<vmem>>, vector<1x1xf32>
    %34 = vector.broadcast %32 : vector<1x16xf32> to vector<16x16xf32>
    %35 = arith.mulf %31, %34 : vector<16x16xf32>
    %cst_25 = arith.constant dense<0.000000e+00> : vector<16xf32>
    %36 = vector.multi_reduction <add>, %35, %cst_25 [1] : vector<16x16xf32> to vector<16xf32>
    %37 = vector.shape_cast %36 : vector<16xf32> to vector<16x1xf32>
    %38 = vector.broadcast %33 : vector<1x1xf32> to vector<16x1xf32>
    %39 = arith.addf %37, %38 : vector<16x1xf32>
    %40 = arith.negf %39 : vector<16x1xf32>
    %41 = math.exp %40 : vector<16x1xf32>
    %cst_26 = arith.constant 1.000000e+00 : f32
    %42 = vector.broadcast %cst_26 : f32 to vector<16x1xf32>
    %43 = arith.addf %42, %41 : vector<16x1xf32>
    %44 = arith.divf %42, %43 : vector<16x1xf32>
    %c0_27 = arith.constant 0 : index
    %c0_28 = arith.constant 0 : index
    %45 = vector.load %arg10[%c0_27, %c0_28] : memref<16x1xf32, #tpu.memory_space<vmem>>, vector<16x1xf32>
    tpu.vector_store %arg10[%c0_27, %c0_28], %44 {strides = array<i32>} : memref<16x1xf32, #tpu.memory_space<vmem>>, vector<16x1xf32>,
    return
  }
  func.func @transform_0(%arg0: i32) -> (i32, i32) {
    %c0_i32 = arith.constant 0 : i32
    %c0_i32_0 = arith.constant 0 : i32
    return %arg0, %c0_i32 : i32, i32
  }
  func.func @transform_1(%arg0: i32) -> (i32, i32) {
    %c0_i32 = arith.constant 0 : i32
    %c0_i32_0 = arith.constant 0 : i32
    return %arg0, %c0_i32 : i32, i32
  }
  func.func @transform_2(%arg0: i32) -> (i32, i32) {
    %c0_i32 = arith.constant 0 : i32
    %c0_i32_0 = arith.constant 0 : i32
    %c0_i32_1 = arith.constant 0 : i32
    return %c0_i32, %c0_i32_0 : i32, i32
  }
  func.func @transform_3(%arg0: i32) -> (i32, i32) {
    %c0_i32 = arith.constant 0 : i32
    %c0_i32_0 = arith.constant 0 : i32
    %c0_i32_1 = arith.constant 0 : i32
    return %c0_i32, %c0_i32_0 : i32, i32
  }
  func.func @transform_4(%arg0: i32) -> (i32, i32) {
    %c0_i32 = arith.constant 0 : i32
    %c0_i32_0 = arith.constant 0 : i32
    %c0_i32_1 = arith.constant 0 : i32
    return %c0_i32, %c0_i32_0 : i32, i32
  }
  func.func @transform_5(%arg0: i32) -> (i32, i32) {
    %c0_i32 = arith.constant 0 : i32
    %c0_i32_0 = arith.constant 0 : i32
    %c0_i32_1 = arith.constant 0 : i32
    return %c0_i32, %c0_i32_0 : i32, i32
  }
  func.func @transform_6(%arg0: i32) -> (i32, i32) {
    %c0_i32 = arith.constant 0 : i32
    %c0_i32_0 = arith.constant 0 : i32
    %c0_i32_1 = arith.constant 0 : i32
    return %c0_i32, %c0_i32_0 : i32, i32
  }
  func.func @transform_7(%arg0: i32) -> (i32, i32) {
    %c0_i32 = arith.constant 0 : i32
    %c0_i32_0 = arith.constant 0 : i32
    %c0_i32_1 = arith.constant 0 : i32
    return %c0_i32, %c0_i32_0 : i32, i32
  }
  func.func @transform_8(%arg0: i32) -> (i32, i32) {
    %c0_i32 = arith.constant 0 : i32
    %c0_i32_0 = arith.constant 0 : i32
    %c0_i32_1 = arith.constant 0 : i32
    return %c0_i32, %c0_i32_0 : i32, i32
  }
  func.func @transform_9(%arg0: i32) -> (i32, i32) {
    %c0_i32 = arith.constant 0 : i32
    %c0_i32_0 = arith.constant 0 : i32
    return %arg0, %c0_i32 : i32, i32
  }
}

</mosaic_0001>

<bundles_post_ra>
// kernel: tpu_custom_call.1
= control target key start
LH: loop header
LB: loop body
LE: loop exit
PB: predicated region body
PF: predicated region fallthrough
CT: control target
= control target key end

     0   :  { %s1244_s0 = inlined_call_operand.vmem [shape: bf16[32,32], index: 0, kind: input, shape index: {}]   ;;  %s1245_s1 = inlined_call_operand.hbm [shape: bf16[32,32], index: 1, kind: input, shape index: {}]   ;;  %s1246_s2 = inlined_call_operand.vmem [shape: bf16[32,32], index: 2, kind: input, shape index: {}]   ;;  %s1247_s3 = inlined_call_operand.hbm [shape: bf16[32,32], index: 3, kind: input, shape index: {}]   ;;  %s1248_s4 = inlined_call_operand.vmem [shape: f32[1,32], index: 4, kind: input, shape index: {}]   ;;  %s1249_s5 = inlined_call_operand.vmem [shape: bf16[32,16], index: 5, kind: input, shape index: {}]   ;;  %s1250_s6 = inlined_call_operand.vmem [shape: f32[1,16], index: 6, kind: input, shape index: {}]   ;;  %s1251_s7 = inlined_call_operand.vmem [shape: f32[1,16], index: 7, kind: input, shape index: {}]   ;;  %s1252_s8 = inlined_call_operand.<no memory space> [shape: f32[1,1], index: 8, kind: input, shape index: {}]   ;;  %s1253_s9 = inlined_call_operand.vmem [shape: f32[32,1], index: 9, kind: output, shape index: {}]  }
   0x1   :  { %v14_v0 = vstv %s1252_s8 }
   0x2   :  { %15 = vst [vmem:[#allocation2] sm:$0x1] %v14_v0 }
   0x3   :  { %16 = vsyncpa [#allocation4], 0 }
   0x4   :  { %18 = vsyncpa [#allocation4 + $0x1], 0 }
   0x5   :  { %19 = vsyncpa [#allocation6], 0  ;;  %s1059_s11 = smov 0   ;;  %s1061_s12 = smov 0  }
   0x6   :  { %s1063_s13 = smov 0   ;;  %s1065_s14 = smov 0  }
   0x7 LB: > { %s756_s8 = sadd.s32 4294967295, %s998_s14   ;;  %p71_p0 = scmp.ne.s32.totalorder %s990_s12, %s986_s11  ;;  %s998_s14 = sphi %s1065_s14, %s1269_s14   ;;  %s994_s13 = sphi %s1063_s13, %s1268_s13   ;;  %s990_s12 = sphi %s1061_s12, %s1267_s12   ;;  %s986_s11 = sphi %s1059_s11, %s1266_s11  }
   0x8   : > { %p1081_p1 = scmp.eq.s32.totalorder %s756_s8, 0  ;;  %p758_p2 = scmp.ge.s32.totalorder %s998_s14, 1 }
   0x9   : > { %p255_p3 = scmp.lt.s32.totalorder %s998_s14, 3  ;;  %s1000_s18 = smov [#allocation5]  }
   0xa   : > { %s1258_s15 = scalar_select %p1081_p1, 1, 0 }
   0xb   : > { %p1089_p4 = por %p1081_p1, %p71_p0  ;;  %p1093_p5 = pnand %p758_p2, %p255_p3 }
   0xc   : > { %s270_s19 = sshll.u32 %s1000_s18, 4  ;;  %s1106_s21 = sadd.s32 1, %s998_s14   ;;  %s271_s19 = int_to_ptr.vmem [resolvable:$true] %s270_s19 }
   0xd   : > { %s1259_s16 = scalar_select %p1089_p4, 1, 0 }
   0xe   : > { %s1260_s17 = scalar_select %p1093_p5, 1, 0 }
   0xf   : > { %p830_p6 = pneg %p1093_p5  ;;  %s58_s22 = sadd.s32 1, %s994_s13 }
  0x10   : > { %s55_s23 = ssub.s32 %s998_s14, %s1106_s21  ;;  %s902_s26 = scalar_lea.hbm %s1247_s3, 256 }
  0x11   : > { %p1101_p7 = pnand %p830_p6, %p1081_p1  ;;  %p903_p8 = scmp.ne.s32.totalorder %s1247_s3, %s902_s26 }
  0x12   : > { %p909_p12 = scmp.lt.u32.totalorder %s902_s26, %s1247_s3 }
  0x13   : > { %p904_p9 = pneg %p1101_p7 }
  0x15   : > { %p905_p10 = pnand %p904_p9, %p903_p8 }
  0x17   : > { %p906_p11 = pneg %p905_p10 }
  0x19   : > { %p911_p13 = pnand %p909_p12, %p906_p11 }
  0x1b   : > { %914 = shalt.err (!%p911_p13)
}
  0x1c   : > { %s915_s10 = scalar_lea.vmem %s271_s19, 256  ;;  %p923_p6 = scmp.lt.s32.totalorder %s271_s19, %s271_s19 }
  0x1d   : > { %p916_p0 = scmp.ne.s32.totalorder %s271_s19, %s915_s10  ;;  %p924_p1 = scmp.lt.s32.totalorder %s915_s10, %s915_s10 }
  0x1f   : > { %p918_p2 = pnand %p916_p0, %p904_p9  ;;  %p925_p4 = por %p924_p1, %p923_p6 }
  0x21   : > { %p919_p3 = pneg %p918_p2 }
  0x23   : > { %p926_p5 = pnand %p925_p4, %p919_p3 }
  0x25   : > { %929 = shalt.err (!%p926_p5)
}
  0x26   : > { %s1001_s11 = smov 64   ;;  %s1002_s18 = smov 4  }
  0x27   : > { %833 = dma.hbm_to_vmem [thread:$0]  (!%p1101_p7), %s1247_s3, 256, %s271_s19, [#allocation6], %s1001_s11, %s1001_s11, %s1002_s18  }
  0x28   : > { %p56_p1 = scmp.eq.s32.totalorder %s55_s23, 0  ;;  %p65_p4 = scmp.ne.s32.totalorder %s994_s13, %s990_s12 }
  0x29   : > { %p66_p5 = scmp.eq.s32.totalorder %s998_s14, 0  ;;  %p839_p8 = scmp.lt.s32.totalorder %s998_s14, 2 }
  0x2a   : > { %s1135_s26 = scalar_select %p56_p1, %s994_s13, %s58_s22  }
  0x2b   : > { %p67_p9 = por %p66_p5, %p65_p4  ;;  %s308_s27 = sand.u32 1, %s994_s13  }
  0x2c   : > { %s761_s28 = sshll.u32 %s308_s27, 3  ;;  %s790_s29 = sshll.u32 %s998_s14, 7 }
  0x2d   : > { %s1142_s20 = scalar_lea.hbm %s1245_s1, %s790_s29  ;;  %s312_s19 = scalar_lea.vmem [#allocation3], %s761_s28 }
  0x2e   : > { %s319_s23 = sshll.u32 %s312_s19, 4  ;;  %p1146_p7 = pnand %p839_p8, %p67_p9  ;;  %s1144_s23 = int_to_ptr.vmem [resolvable:$true] %s319_s23 }
  0x2f   : > { %s1150_s24 = scalar_lea.sflag [#allocation4], %s308_s27  ;;  %s930_s25 = scalar_lea.hbm %s1142_s20, 128 }
  0x30   : > { %p931_p10 = scmp.ne.s32.totalorder %s1142_s20, %s930_s25  ;;  %p932_p11 = pneg %p1146_p7 }
  0x31   : > { %s935_s30 = scalar_lea.hbm %s1245_s1, 256  ;;  %p936_p0 = scmp.lt.u32.totalorder %s1142_s20, %s1245_s1 }
  0x32   : > { %p933_p12 = pnand %p932_p11, %p931_p10  ;;  %p937_p2 = scmp.lt.u32.totalorder %s935_s30, %s930_s25 }
  0x33   : > { %p939_p6 = scmp.lt.u32.totalorder %s930_s25, %s1142_s20 }
  0x34   : > { %p934_p13 = pneg %p933_p12  ;;  %p938_p3 = por %p937_p2, %p936_p0 }
  0x36   : > { %p940_p1 = por %p939_p6, %p938_p3 }
  0x38   : > { %p941_p4 = pnand %p940_p1, %p934_p13 }
  0x3a   : > { %944 = shalt.err (!%p941_p4)
}
  0x3b   : > { %s945_s27 = scalar_lea.vmem %s1144_s23, 128  ;;  %s1003_s28 = smov [#allocation3]  }
  0x3c   : > { %p946_p5 = scmp.ne.s32.totalorder %s1144_s23, %s945_s27  ;;  %s950_s29 = sshll.u32 %s1003_s28, 4  ;;  %s951_s29 = int_to_ptr.vmem [resolvable:$false] %s950_s29 }
  0x3d   : > { %s952_s10 = scalar_lea.vmem %s951_s29, 256  ;;  %p953_p10 = scmp.lt.s32.totalorder %s1144_s23, %s951_s29 }
  0x3e   : > { %p948_p8 = pnand %p946_p5, %p932_p11  ;;  %p954_p12 = scmp.lt.s32.totalorder %s952_s10, %s945_s27 }
  0x40   : > { %p949_p9 = pneg %p948_p8  ;;  %p955_p0 = por %p954_p12, %p953_p10 }
  0x42   : > { %p956_p2 = pnand %p955_p0, %p949_p9 }
  0x44   : > { %959 = shalt.err (!%p956_p2)
}
  0x45   : > { %837 = dma.hbm_to_vmem [thread:$0]  (!%p1146_p7), %s1142_s20, 128, %s1144_s23, %s1150_s24, %s1001_s11, %s1001_s11, %s1002_s18  }
  0x46   : > { %p1263_p11 = scmp.ne.s32.totalorder %s1260_s17, 0 }
  0x47   : > { %s333_s25 = sand.u32 (!%p1263_p11), 1, %s990_s12   ;;  %p1264_p13 = scmp.ne.s32.totalorder (!%p1263_p11), %s1259_s16, 0 }
  0x48   : > { %331 = sbr.rel (%p1263_p11) target bundleno = 739 (0x2e3), region = 56  ;;  %s765_s30 = sshll.u32 (!%p1263_p11), %s333_s25, 3 }
  0x49   : > { %s334_s19 = scalar_lea.sflag (!%p1263_p11), [#allocation4], %s333_s25  ;;  %s337_s27 = scalar_lea.vmem (!%p1263_p11), [#allocation3], %s765_s30 }
  0x4f   : > { %977 = dma.done.wait (%p1264_p13), %s334_s19, 128  }
  0x50   : > { %979 = vsyncadd (%p1264_p13), %s334_s19, 4294967168  ;;  %p1265_p3 = scmp.ne.s32.totalorder %s1258_s15, 0 }
  0x52   : > { %981 = dma.done.wait (%p1265_p3), [#allocation6], 256  }
  0x53   : > { %983 = vsyncadd (%p1265_p3), [#allocation6], 4294967040  ;;  %s767_s17 = sshll.u32 %s756_s8, 1  ;;  %v1004_v1 = vmov 0.0   ;;  %vm1005_vm0 = vmmov 0   ;;  %v878_v2 = vld [vmem:[#allocation5] sm:$0xff]  }
  0x54   : > { %800 = vmatprep.subr.bf16.mxu0 %v1004_v1  ;;  %808 = vmatprep.subr.bf16.mxu1 %v1004_v1  ;;  %p382_p7 = scmp.lt.s32.totalorder %s767_s17, 3  ;;  %v879_v3 = vld [vmem:[%s1246_s2] sm:$0xff]   ;;  %v881_v5 = vld [vmem:[%s1246_s2 + $0x8] sm:$0xff]   ;;  %vm424_vm1 = vcmask 261120   ;;  %vm637_vm2 = vcmask 130048   ;;  %vm664_vm3 = vcmask 7168  }
  0x55   : > { %804 = vmatprep.mubr.msk.bf16.mxu0 %vm1005_vm0, %v1004_v1  ;;  %812 = vmatprep.mubr.msk.bf16.mxu1 %vm1005_vm0, %v1004_v1  ;;  %v880_v4 = vld [vmem:[#allocation5 + $0x8] sm:$0xff]   ;;  %v882_v6 = vld [vmem:[%s337_s27] sm:$0xff]  }
  0x56   : > { %s1271_s17 = smov (!%p382_p7, %s767_s17), 3  ;;  %801 = vmatpush3.bf16.msra.mxu0 %v878_v2  ;;  %809 = vmatpush3.bf16.msra.mxu1 %v879_v3  ;;  %v884_v8 = vld [vmem:[%s1249_s5] sm:$0xff]   ;;  %v885_v9 = vld [vmem:[%s1249_s5 + $0x8] sm:$0xff]  }
  0x57   : > { %s768_s16 = sshll.u32 %s1271_s17, 2  ;;  %802 = vmatprep.subr.bf16.mxu0 %v1004_v1  ;;  %810 = vmatprep.subr.bf16.mxu1 %v1004_v1  ;;  %v779_v12 = vld [vmem:[%s1248_s4] ss:$0 sm:$0xff]  ;;  %s770_s11 = sshll.u32 %s1271_s17, 3 }
  0x58   : > { %s385_s18 = scalar_lea.vmem %s1244_s0, %s768_s16  ;;  %v780_v34 = vld [vmem:[%s1250_s6] ss:$0 sm:$0xff]  ;;  %s392_s8 = scalar_lea.vmem %s1253_s9, %s770_s11 }
  0x59   : > { %v883_v7 = vld [vmem:[%s385_s18] sm:$0xff]  }
  0x5a   : > { %803 = vmatpush3.bf16.msra.mxu0 %v880_v4  ;;  %811 = vmatpush3.bf16.msra.mxu1 %v881_v5  ;;  %v784_v47 = vld [vmem:[%s1251_s7] ss:$0 sm:$0xff] }
  0x5b   : > { %816 = vmatprep.subr.bf16.mxu0 %v1004_v1  ;;  %v785_v56 = vld [vmem:[#allocation2] ss:$0 sm:$0xff] }
  0x5d   : > { %805 = vmatmul.mubr.msk.bf16.vlgmr.msra.gmra.mrb[0].mxu0 %vm424_vm1, %v882_v6  ;;  %813 = vmatmul.mubr.msk.bf16.vlgmr.msra.gmra.mrb[0].mxu1 %vm424_vm1, %v883_v7 }
  0x5e   : > { %820 = vmatprep.mubr.msk.bf16.mxu0 %vm1005_vm0, %v1004_v1  ;;  %817 = vmatpush3.bf16.msra.mxu0 %v884_v8 }
  0x5f   : > { %818 = vmatprep.subr.bf16.mxu0 %v1004_v1 }
  0x62   : > { %819 = vmatpush3.bf16.msra.mxu0 %v885_v9 }
 0x130   : > { %v462_v10 = vpop.f32.mrb[0].mxu0  ;;  %v523_v11 = vpop.f32.mrb[0].mxu1 }
 0x131   : > { %v806_v13 = vpop.f32.mrb[1].mxu0  ;;  %v524_v14 = vadd.f32 %v523_v11, %v462_v10  ;;  %v814_v15 = vpop.f32.mrb[1].mxu1 }
 0x132   : > { %v465_v16 = vpop.f32.mrb[2].mxu0  ;;  %v526_v17 = vpop.f32.mrb[2].mxu1 }
 0x133   : > { %v807_v18 = vpop.f32.mrb[3].mxu0  ;;  %v537_v19 = vadd.f32 %v779_v12, %v524_v14  ;;  %v527_v20 = vadd.f32 %v526_v17, %v465_v16  ;;  %v815_v21 = vpop.f32.mrb[3].mxu1 }
 0x135   : > { %v541_v22 = vmul.f32 0.70710677, %v537_v19  ;;  %v538_v23 = vadd.f32 %v779_v12, %v527_v20  ;;  %v539_v28 = vmul.f32 0.5, %v537_v19 }
 0x137   : > { %886 = verf.f32 %v541_v22  ;;  %v542_v24 = vmul.f32 0.70710677, %v538_v23  ;;  %v540_v29 = vmul.f32 0.5, %v538_v23 }
 0x139   : > { %888 = verf.f32 %v542_v24 }
 0x141   : > { %v887_v25 = vpop.eup %886 }
 0x142   : > { %v545_v26 = vadd.f32 1.0, %v887_v25 }
 0x143   : > { %v889_v27 = vpop.eup %888 }
 0x144   : > { %v546_v30 = vadd.f32 1.0, %v889_v27  ;;  %v547_v31 = vmul.f32 %v545_v26, %v539_v28 }
 0x146   : > { %v548_v32 = vmul.f32 %v546_v30, %v540_v29 }
 0x148   : > { %v549_v33 = vpack.c.bf16 %v548_v32, %v547_v31 }
 0x14a   : > { %821 = vmatmul.mubr.msk.bf16.vlgmr.msra.gmra.mrb[4].mxu0 %vm424_vm1, %v549_v33 }
 0x21d   : > { %v610_v35 = vpop.f32.mrb[4].mxu0 }
 0x21e   : > { %v611_v36 = vadd.f32 %v780_v34, %v610_v35  ;;  %v822_v37 = vpop.f32.mrb[5].mxu0 }
 0x21f   : > { %v613_v38 = vpop.f32.mrb[6].mxu0 }
 0x220   : > { %v619_v39 = vmul.f32 0.70710677, %v611_v36  ;;  %v614_v40 = vadd.f32 %v780_v34, %v613_v38  ;;  %v823_v41 = vpop.f32.mrb[7].mxu0  ;;  %v617_v44 = vmul.f32 0.5, %v611_v36 }
 0x222   : > { %890 = verf.f32 %v619_v39  ;;  %v620_v42 = vmul.f32 0.70710677, %v614_v40  ;;  %v618_v48 = vmul.f32 0.5, %v614_v40 }
 0x224   : > { %892 = verf.f32 %v620_v42 }
 0x22c   : > { %v891_v43 = vpop.eup %890 }
 0x22d   : > { %v623_v45 = vadd.f32 1.0, %v891_v43 }
 0x22e   : > { %v893_v46 = vpop.eup %892 }
 0x22f   : > { %v624_v49 = vadd.f32 1.0, %v893_v46  ;;  %v625_v50 = vmul.f32 %v623_v45, %v617_v44 }
 0x231   : > { %v635_v51 = vmul.f32 %v784_v47, %v625_v50  ;;  %v626_v52 = vmul.f32 %v624_v49, %v618_v48 }
 0x233   : > { %v638_v53 = vsel %vm637_vm2, %v635_v51, 0.0  ;;  %v636_v54 = vmul.f32 %v784_v47, %v626_v52 }
 0x234   : > { %639 = vadd.xlane.f32.xlu0 %v638_v53 }
 0x235   : > { %v641_v55 = vsel %vm637_vm2, %v636_v54, 0.0 }
 0x238   : > { %642 = vadd.xlane.f32.xlu0 %v641_v55 }
 0x2c1   : > { %v640_v57 = vpop.xlane.xlu0 %639 }
 0x2c2   : > { %v650_v58 = vadd.f32 %v785_v56, %v640_v57 }
 0x2c4   : > { %v786_v59 = vmul.f32 -1.442695, %v650_v58 }
 0x2c5   : > { %v643_v60 = vpop.xlane.xlu0 %642 }
 0x2c6   : > { %894 = vpow2.f32 %v786_v59  ;;  %v651_v61 = vadd.f32 %v785_v56, %v643_v60 }
 0x2c8   : > { %v787_v62 = vmul.f32 -1.442695, %v651_v61 }
 0x2ca   : > { %896 = vpow2.f32 %v787_v62 }
 0x2d0   : > { %v895_v63 = vpop.eup %894 }
 0x2d1   : > { %v658_v0 = vadd.f32 1.0, %v895_v63 }
 0x2d3   : > { %898 = vrcp.f32 %v658_v0 }
 0x2d4   : > { %v897_v1 = vpop.eup %896 }
 0x2d5   : > { %v659_v2 = vadd.f32 1.0, %v897_v1 }
 0x2d7   : > { %900 = vrcp.f32 %v659_v2 }
 0x2dd   : > { %v899_v3 = vpop.eup %898 }
 0x2de   : > { %665 = vst.msk [vmem:[%s392_s8] sm:$0xff] %vm664_vm3, %v899_v3 }
 0x2e1   : > { %v901_v4 = vpop.eup %900 }
 0x2e2   : > { %666 = vst.msk [vmem:[%s392_s8 + $0x8] sm:$0xff] %vm664_vm3, %v901_v4 }
 0x2e3 PF: > { %p22_p6 = scmp.ge.s32.totalorder %s1106_s21, 4   ;;  %s1266_s11 = smov %s990_s12 }
 0x2e4   : > { %s1267_s12 = smov %s994_s13  ;;  %s1268_s13 = smov %s1135_s26 }
 0x2e5   : > { %s1269_s14 = smov %s1106_s21  ;;  %24 = sbr.rel (!%p22_p6) target bundleno = 7 (0x7), region = 103 }
 0x2ec   :  { %689 = vsyncpa [#allocation4], 1 }
 0x2ed   :  { %691 = vsyncpa [#allocation4 + $0x1], 1 }
 0x2ee   :  { %692 = vsyncpa [#allocation6], 1 }

// kernel: tpu_custom_call.1
= control target key start
LH: loop header
LB: loop body
LE: loop exit
PB: predicated region body
PF: predicated region fallthrough
CT: control target
= control target key end

     0   :  { %s1244_s0 = inlined_call_operand.vmem [shape: bf16[32,32], index: 0, kind: input, shape index: {}]   ;;  %s1245_s1 = inlined_call_operand.hbm [shape: bf16[32,32], index: 1, kind: input, shape index: {}]   ;;  %s1246_s2 = inlined_call_operand.vmem [shape: bf16[32,32], index: 2, kind: input, shape index: {}]   ;;  %s1247_s3 = inlined_call_operand.hbm [shape: bf16[32,32], index: 3, kind: input, shape index: {}]   ;;  %s1248_s4 = inlined_call_operand.vmem [shape: f32[1,32], index: 4, kind: input, shape index: {}]   ;;  %s1249_s5 = inlined_call_operand.vmem [shape: bf16[32,16], index: 5, kind: input, shape index: {}]   ;;  %s1250_s6 = inlined_call_operand.vmem [shape: f32[1,16], index: 6, kind: input, shape index: {}]   ;;  %s1251_s7 = inlined_call_operand.vmem [shape: f32[1,16], index: 7, kind: input, shape index: {}]   ;;  %s1252_s8 = inlined_call_operand.<no memory space> [shape: f32[1,1], index: 8, kind: input, shape index: {}]   ;;  %s1253_s9 = inlined_call_operand.vmem [shape: f32[32,1], index: 9, kind: output, shape index: {}]  }
   0x1   :  { %v14_v0 = vstv %s1252_s8 }
   0x2   :  { %15 = vst [vmem:[#allocation2] sm:$0x1] %v14_v0 }
   0x3   :  { %16 = vsyncpa [#allocation4], 0 }
   0x4   :  { %18 = vsyncpa [#allocation4 + $0x1], 0 }
   0x5   :  { %19 = vsyncpa [#allocation6], 0  ;;  %s1059_s11 = smov 0   ;;  %s1061_s12 = smov 0  }
   0x6   :  { %s1063_s13 = smov 0   ;;  %s1065_s14 = smov 0  }
   0x7 LB: > { %s756_s8 = sadd.s32 4294967295, %s998_s14   ;;  %p71_p0 = scmp.ne.s32.totalorder %s990_s12, %s986_s11  ;;  %s998_s14 = sphi %s1065_s14, %s1269_s14   ;;  %s994_s13 = sphi %s1063_s13, %s1268_s13   ;;  %s990_s12 = sphi %s1061_s12, %s1267_s12   ;;  %s986_s11 = sphi %s1059_s11, %s1266_s11  }
   0x8   : > { %p1081_p1 = scmp.eq.s32.totalorder %s756_s8, 0  ;;  %p758_p2 = scmp.ge.s32.totalorder %s998_s14, 1 }
   0x9   : > { %p255_p3 = scmp.lt.s32.totalorder %s998_s14, 3  ;;  %s1000_s18 = smov [#allocation5]  }
   0xa   : > { %s1258_s15 = scalar_select %p1081_p1, 1, 0 }
   0xb   : > { %p1089_p4 = por %p1081_p1, %p71_p0  ;;  %p1093_p5 = pnand %p758_p2, %p255_p3 }
   0xc   : > { %s270_s19 = sshll.u32 %s1000_s18, 4  ;;  %s1106_s21 = sadd.s32 1, %s998_s14   ;;  %s271_s19 = int_to_ptr.vmem [resolvable:$true] %s270_s19 }
   0xd   : > { %s1259_s16 = scalar_select %p1089_p4, 1, 0 }
   0xe   : > { %s1260_s17 = scalar_select %p1093_p5, 1, 0 }
   0xf   : > { %p830_p6 = pneg %p1093_p5  ;;  %s58_s22 = sadd.s32 1, %s994_s13 }
  0x10   : > { %s55_s23 = ssub.s32 %s998_s14, %s1106_s21  ;;  %s902_s26 = scalar_lea.hbm %s1247_s3, 256 }
  0x11   : > { %p1101_p7 = pnand %p830_p6, %p1081_p1  ;;  %p903_p8 = scmp.ne.s32.totalorder %s1247_s3, %s902_s26 }
  0x12   : > { %p909_p12 = scmp.lt.u32.totalorder %s902_s26, %s1247_s3 }
  0x13   : > { %p904_p9 = pneg %p1101_p7 }
  0x15   : > { %p905_p10 = pnand %p904_p9, %p903_p8 }
  0x17   : > { %p906_p11 = pneg %p905_p10 }
  0x19   : > { %p911_p13 = pnand %p909_p12, %p906_p11 }
  0x1b   : > { %914 = shalt.err (!%p911_p13)
}
  0x1c   : > { %s915_s10 = scalar_lea.vmem %s271_s19, 256  ;;  %p923_p6 = scmp.lt.s32.totalorder %s271_s19, %s271_s19 }
  0x1d   : > { %p916_p0 = scmp.ne.s32.totalorder %s271_s19, %s915_s10  ;;  %p924_p1 = scmp.lt.s32.totalorder %s915_s10, %s915_s10 }
  0x1f   : > { %p918_p2 = pnand %p916_p0, %p904_p9  ;;  %p925_p4 = por %p924_p1, %p923_p6 }
  0x21   : > { %p919_p3 = pneg %p918_p2 }
  0x23   : > { %p926_p5 = pnand %p925_p4, %p919_p3 }
  0x25   : > { %929 = shalt.err (!%p926_p5)
}
  0x26   : > { %s1001_s11 = smov 64   ;;  %s1002_s18 = smov 4  }
  0x27   : > { %833 = dma.hbm_to_vmem [thread:$0]  (!%p1101_p7), %s1247_s3, 256, %s271_s19, [#allocation6], %s1001_s11, %s1001_s11, %s1002_s18  }
  0x28   : > { %p56_p1 = scmp.eq.s32.totalorder %s55_s23, 0  ;;  %p65_p4 = scmp.ne.s32.totalorder %s994_s13, %s990_s12 }
  0x29   : > { %p66_p5 = scmp.eq.s32.totalorder %s998_s14, 0  ;;  %p839_p8 = scmp.lt.s32.totalorder %s998_s14, 2 }
  0x2a   : > { %s1135_s26 = scalar_select %p56_p1, %s994_s13, %s58_s22  }
  0x2b   : > { %p67_p9 = por %p66_p5, %p65_p4  ;;  %s308_s27 = sand.u32 1, %s994_s13  }
  0x2c   : > { %s761_s28 = sshll.u32 %s308_s27, 3  ;;  %s790_s29 = sshll.u32 %s998_s14, 7 }
  0x2d   : > { %s1142_s20 = scalar_lea.hbm %s1245_s1, %s790_s29  ;;  %s312_s19 = scalar_lea.vmem [#allocation3], %s761_s28 }
  0x2e   : > { %s319_s23 = sshll.u32 %s312_s19, 4  ;;  %p1146_p7 = pnand %p839_p8, %p67_p9  ;;  %s1144_s23 = int_to_ptr.vmem [resolvable:$true] %s319_s23 }
  0x2f   : > { %s1150_s24 = scalar_lea.sflag [#allocation4], %s308_s27  ;;  %s930_s25 = scalar_lea.hbm %s1142_s20, 128 }
  0x30   : > { %p931_p10 = scmp.ne.s32.totalorder %s1142_s20, %s930_s25  ;;  %p932_p11 = pneg %p1146_p7 }
  0x31   : > { %s935_s30 = scalar_lea.hbm %s1245_s1, 256  ;;  %p936_p0 = scmp.lt.u32.totalorder %s1142_s20, %s1245_s1 }
  0x32   : > { %p933_p12 = pnand %p932_p11, %p931_p10  ;;  %p937_p2 = scmp.lt.u32.totalorder %s935_s30, %s930_s25 }
  0x33   : > { %p939_p6 = scmp.lt.u32.totalorder %s930_s25, %s1142_s20 }
  0x34   : > { %p934_p13 = pneg %p933_p12  ;;  %p938_p3 = por %p937_p2, %p936_p0 }
  0x36   : > { %p940_p1 = por %p939_p6, %p938_p3 }
  0x38   : > { %p941_p4 = pnand %p940_p1, %p934_p13 }
  0x3a   : > { %944 = shalt.err (!%p941_p4)
}
  0x3b   : > { %s945_s27 = scalar_lea.vmem %s1144_s23, 128  ;;  %s1003_s28 = smov [#allocation3]  }
  0x3c   : > { %p946_p5 = scmp.ne.s32.totalorder %s1144_s23, %s945_s27  ;;  %s950_s29 = sshll.u32 %s1003_s28, 4  ;;  %s951_s29 = int_to_ptr.vmem [resolvable:$false] %s950_s29 }
  0x3d   : > { %s952_s10 = scalar_lea.vmem %s951_s29, 256  ;;  %p953_p10 = scmp.lt.s32.totalorder %s1144_s23, %s951_s29 }
  0x3e   : > { %p948_p8 = pnand %p946_p5, %p932_p11  ;;  %p954_p12 = scmp.lt.s32.totalorder %s952_s10, %s945_s27 }
  0x40   : > { %p949_p9 = pneg %p948_p8  ;;  %p955_p0 = por %p954_p12, %p953_p10 }
  0x42   : > { %p956_p2 = pnand %p955_p0, %p949_p9 }
  0x44   : > { %959 = shalt.err (!%p956_p2)
}
  0x45   : > { %837 = dma.hbm_to_vmem [thread:$0]  (!%p1146_p7), %s1142_s20, 128, %s1144_s23, %s1150_s24, %s1001_s11, %s1001_s11, %s1002_s18  }
  0x46   : > { %p1263_p11 = scmp.ne.s32.totalorder %s1260_s17, 0 }
  0x47   : > { %s333_s25 = sand.u32 (!%p1263_p11), 1, %s990_s12   ;;  %p1264_p13 = scmp.ne.s32.totalorder (!%p1263_p11), %s1259_s16, 0 }
  0x48   : > { %331 = sbr.rel (%p1263_p11) target bundleno = 739 (0x2e3), region = 56  ;;  %s765_s30 = sshll.u32 (!%p1263_p11), %s333_s25, 3 }
  0x49   : > { %s334_s19 = scalar_lea.sflag (!%p1263_p11), [#allocation4], %s333_s25  ;;  %s337_s27 = scalar_lea.vmem (!%p1263_p11), [#allocation3], %s765_s30 }
  0x4f   : > { %977 = dma.done.wait (%p1264_p13), %s334_s19, 128  }
  0x50   : > { %979 = vsyncadd (%p1264_p13), %s334_s19, 4294967168  ;;  %p1265_p3 = scmp.ne.s32.totalorder %s1258_s15, 0 }
  0x52   : > { %981 = dma.done.wait (%p1265_p3), [#allocation6], 256  }
  0x53   : > { %983 = vsyncadd (%p1265_p3), [#allocation6], 4294967040  ;;  %s767_s17 = sshll.u32 %s756_s8, 1  ;;  %v1004_v1 = vmov 0.0   ;;  %vm1005_vm0 = vmmov 0   ;;  %v878_v2 = vld [vmem:[#allocation5] sm:$0xff]  }
  0x54   : > { %800 = vmatprep.subr.bf16.mxu0 %v1004_v1  ;;  %808 = vmatprep.subr.bf16.mxu1 %v1004_v1  ;;  %p382_p7 = scmp.lt.s32.totalorder %s767_s17, 3  ;;  %v879_v3 = vld [vmem:[%s1246_s2] sm:$0xff]   ;;  %v881_v5 = vld [vmem:[%s1246_s2 + $0x8] sm:$0xff]   ;;  %vm424_vm1 = vcmask 261120   ;;  %vm637_vm2 = vcmask 130048   ;;  %vm664_vm3 = vcmask 7168  }
  0x55   : > { %804 = vmatprep.mubr.msk.bf16.mxu0 %vm1005_vm0, %v1004_v1  ;;  %812 = vmatprep.mubr.msk.bf16.mxu1 %vm1005_vm0, %v1004_v1  ;;  %v880_v4 = vld [vmem:[#allocation5 + $0x8] sm:$0xff]   ;;  %v882_v6 = vld [vmem:[%s337_s27] sm:$0xff]  }
  0x56   : > { %s1271_s17 = smov (!%p382_p7, %s767_s17), 3  ;;  %801 = vmatpush3.bf16.msra.mxu0 %v878_v2  ;;  %809 = vmatpush3.bf16.msra.mxu1 %v879_v3  ;;  %v884_v8 = vld [vmem:[%s1249_s5] sm:$0xff]   ;;  %v885_v9 = vld [vmem:[%s1249_s5 + $0x8] sm:$0xff]  }
  0x57   : > { %s768_s16 = sshll.u32 %s1271_s17, 2  ;;  %802 = vmatprep.subr.bf16.mxu0 %v1004_v1  ;;  %810 = vmatprep.subr.bf16.mxu1 %v1004_v1  ;;  %v779_v12 = vld [vmem:[%s1248_s4] ss:$0 sm:$0xff]  ;;  %s770_s11 = sshll.u32 %s1271_s17, 3 }
  0x58   : > { %s385_s18 = scalar_lea.vmem %s1244_s0, %s768_s16  ;;  %v780_v34 = vld [vmem:[%s1250_s6] ss:$0 sm:$0xff]  ;;  %s392_s8 = scalar_lea.vmem %s1253_s9, %s770_s11 }
  0x59   : > { %v883_v7 = vld [vmem:[%s385_s18] sm:$0xff]  }
  0x5a   : > { %803 = vmatpush3.bf16.msra.mxu0 %v880_v4  ;;  %811 = vmatpush3.bf16.msra.mxu1 %v881_v5  ;;  %v784_v47 = vld [vmem:[%s1251_s7] ss:$0 sm:$0xff] }
  0x5b   : > { %816 = vmatprep.subr.bf16.mxu0 %v1004_v1  ;;  %v785_v56 = vld [vmem:[#allocation2] ss:$0 sm:$0xff] }
  0x5d   : > { %805 = vmatmul.mubr.msk.bf16.vlgmr.msra.gmra.mrb[0].mxu0 %vm424_vm1, %v882_v6  ;;  %813 = vmatmul.mubr.msk.bf16.vlgmr.msra.gmra.mrb[0].mxu1 %vm424_vm1, %v883_v7 }
  0x5e   : > { %820 = vmatprep.mubr.msk.bf16.mxu0 %vm1005_vm0, %v1004_v1  ;;  %817 = vmatpush3.bf16.msra.mxu0 %v884_v8 }
  0x5f   : > { %818 = vmatprep.subr.bf16.mxu0 %v1004_v1 }
  0x62   : > { %819 = vmatpush3.bf16.msra.mxu0 %v885_v9 }
 0x130   : > { %v462_v10 = vpop.f32.mrb[0].mxu0  ;;  %v523_v11 = vpop.f32.mrb[0].mxu1 }
 0x131   : > { %v806_v13 = vpop.f32.mrb[1].mxu0  ;;  %v524_v14 = vadd.f32 %v523_v11, %v462_v10  ;;  %v814_v15 = vpop.f32.mrb[1].mxu1 }
 0x132   : > { %v465_v16 = vpop.f32.mrb[2].mxu0  ;;  %v526_v17 = vpop.f32.mrb[2].mxu1 }
 0x133   : > { %v807_v18 = vpop.f32.mrb[3].mxu0  ;;  %v537_v19 = vadd.f32 %v779_v12, %v524_v14  ;;  %v527_v20 = vadd.f32 %v526_v17, %v465_v16  ;;  %v815_v21 = vpop.f32.mrb[3].mxu1 }
 0x135   : > { %v541_v22 = vmul.f32 0.70710677, %v537_v19  ;;  %v538_v23 = vadd.f32 %v779_v12, %v527_v20  ;;  %v539_v28 = vmul.f32 0.5, %v537_v19 }
 0x137   : > { %886 = verf.f32 %v541_v22  ;;  %v542_v24 = vmul.f32 0.70710677, %v538_v23  ;;  %v540_v29 = vmul.f32 0.5, %v538_v23 }
 0x139   : > { %888 = verf.f32 %v542_v24 }
 0x141   : > { %v887_v25 = vpop.eup %886 }
 0x142   : > { %v545_v26 = vadd.f32 1.0, %v887_v25 }
 0x143   : > { %v889_v27 = vpop.eup %888 }
 0x144   : > { %v546_v30 = vadd.f32 1.0, %v889_v27  ;;  %v547_v31 = vmul.f32 %v545_v26, %v539_v28 }
 0x146   : > { %v548_v32 = vmul.f32 %v546_v30, %v540_v29 }
 0x148   : > { %v549_v33 = vpack.c.bf16 %v548_v32, %v547_v31 }
 0x14a   : > { %821 = vmatmul.mubr.msk.bf16.vlgmr.msra.gmra.mrb[4].mxu0 %vm424_vm1, %v549_v33 }
 0x21d   : > { %v610_v35 = vpop.f32.mrb[4].mxu0 }
 0x21e   : > { %v611_v36 = vadd.f32 %v780_v34, %v610_v35  ;;  %v822_v37 = vpop.f32.mrb[5].mxu0 }
 0x21f   : > { %v613_v38 = vpop.f32.mrb[6].mxu0 }
 0x220   : > { %v619_v39 = vmul.f32 0.70710677, %v611_v36  ;;  %v614_v40 = vadd.f32 %v780_v34, %v613_v38  ;;  %v823_v41 = vpop.f32.mrb[7].mxu0  ;;  %v617_v44 = vmul.f32 0.5, %v611_v36 }
 0x222   : > { %890 = verf.f32 %v619_v39  ;;  %v620_v42 = vmul.f32 0.70710677, %v614_v40  ;;  %v618_v48 = vmul.f32 0.5, %v614_v40 }
 0x224   : > { %892 = verf.f32 %v620_v42 }
 0x22c   : > { %v891_v43 = vpop.eup %890 }
 0x22d   : > { %v623_v45 = vadd.f32 1.0, %v891_v43 }
 0x22e   : > { %v893_v46 = vpop.eup %892 }
 0x22f   : > { %v624_v49 = vadd.f32 1.0, %v893_v46  ;;  %v625_v50 = vmul.f32 %v623_v45, %v617_v44 }
 0x231   : > { %v635_v51 = vmul.f32 %v784_v47, %v625_v50  ;;  %v626_v52 = vmul.f32 %v624_v49, %v618_v48 }
 0x233   : > { %v638_v53 = vsel %vm637_vm2, %v635_v51, 0.0  ;;  %v636_v54 = vmul.f32 %v784_v47, %v626_v52 }
 0x234   : > { %639 = vadd.xlane.f32.xlu0 %v638_v53 }
 0x235   : > { %v641_v55 = vsel %vm637_vm2, %v636_v54, 0.0 }
 0x238   : > { %642 = vadd.xlane.f32.xlu0 %v641_v55 }
 0x2c1   : > { %v640_v57 = vpop.xlane.xlu0 %639 }
 0x2c2   : > { %v650_v58 = vadd.f32 %v785_v56, %v640_v57 }
 0x2c4   : > { %v786_v59 = vmul.f32 -1.442695, %v650_v58 }
 0x2c5   : > { %v643_v60 = vpop.xlane.xlu0 %642 }
 0x2c6   : > { %894 = vpow2.f32 %v786_v59  ;;  %v651_v61 = vadd.f32 %v785_v56, %v643_v60 }
 0x2c8   : > { %v787_v62 = vmul.f32 -1.442695, %v651_v61 }
 0x2ca   : > { %896 = vpow2.f32 %v787_v62 }
 0x2d0   : > { %v895_v63 = vpop.eup %894 }
 0x2d1   : > { %v658_v0 = vadd.f32 1.0, %v895_v63 }
 0x2d3   : > { %898 = vrcp.f32 %v658_v0 }
 0x2d4   : > { %v897_v1 = vpop.eup %896 }
 0x2d5   : > { %v659_v2 = vadd.f32 1.0, %v897_v1 }
 0x2d7   : > { %900 = vrcp.f32 %v659_v2 }
 0x2dd   : > { %v899_v3 = vpop.eup %898 }
 0x2de   : > { %665 = vst.msk [vmem:[%s392_s8] sm:$0xff] %vm664_vm3, %v899_v3 }
 0x2e1   : > { %v901_v4 = vpop.eup %900 }
 0x2e2   : > { %666 = vst.msk [vmem:[%s392_s8 + $0x8] sm:$0xff] %vm664_vm3, %v901_v4 }
 0x2e3 PF: > { %p22_p6 = scmp.ge.s32.totalorder %s1106_s21, 4   ;;  %s1266_s11 = smov %s990_s12 }
 0x2e4   : > { %s1267_s12 = smov %s994_s13  ;;  %s1268_s13 = smov %s1135_s26 }
 0x2e5   : > { %s1269_s14 = smov %s1106_s21  ;;  %24 = sbr.rel (!%p22_p6) target bundleno = 7 (0x7), region = 103 }
 0x2ec   :  { %689 = vsyncpa [#allocation4], 1 }
 0x2ed   :  { %691 = vsyncpa [#allocation4 + $0x1], 1 }
 0x2ee   :  { %692 = vsyncpa [#allocation6], 1 }

</bundles_post_ra>
